<compile_context>
chip_gen: v6e
topology: v6e:2x2x1
jax: 0.10.0
libtpu: 0.0.40
codegen_flags: <defaults>
</compile_context>

<pallas_src>
import functools

import jax
import jax.numpy as jnp
import numpy as np
from jax.experimental import pallas as pl
from jax.experimental.pallas import tpu as pltpu

EPS = 1e-5  # nn.InstanceNorm3d default


def _vmem_limit_bytes():
    """~80% of physical VMEM (128 MiB v5e/v6e, 64 MiB v7x); safe fallback."""
    phys = 64 * 1024 * 1024  # conservative default (v7x per-core physical VMEM)
    try:
        info = pltpu.get_tpu_info()
        for name in ("vmem_capacity_bytes", "vmem_bytes"):
            v = getattr(info, name, None)
            if v:
                phys = int(v)
                break
    except Exception:
        pass
    return min(int(phys * 0.8), 112 * 1024 * 1024)


# ----------------------------- fused single pass -----------------------------
def _conv_norm_relu_fused_kernel(p_ref, w_ref, o_ref, *, pn, tile_p, eps):
    """Grid = (N, Cout-tiles, P-tiles); P axis is innermost and "arbitrary".

    p_ref: (1, K, tile_p)        compute-dtype im2col patch tile (lane dim = P)
    w_ref: (tile_c, K)           compute-dtype flattened conv-weight tile
    o_ref: (1, tile_c, Pn_pad)   output block, resident across the P axis:
                                 filled tile-by-tile, normalized in the epilogue.
    """
    p_idx = pl.program_id(2)

    # MXU matmul with f32 accumulation; lane dim of the store is tile_p (>=128).
    y = jnp.dot(w_ref[...], p_ref[0], preferred_element_type=jnp.float32)
    start = pl.multiple_of(p_idx * tile_p, tile_p)
    o_ref[0, :, pl.ds(start, tile_p)] = y.astype(o_ref.dtype)

    @pl.when(p_idx == pl.num_programs(2) - 1)
    def _epilogue():
        # Exact two-pass InstanceNorm statistics from the VMEM-resident block;
        # padded P columns are masked out of both moments.
        y_all = o_ref[0].astype(jnp.float32)                     # (tile_c, Pn_pad)
        valid = jax.lax.broadcasted_iota(jnp.int32, (1, y_all.shape[1]), 1) < pn
        inv_pn = 1.0 / pn
        mu = jnp.sum(jnp.where(valid, y_all, 0.0), axis=1, keepdims=True) * inv_pn
        d = jnp.where(valid, y_all - mu, 0.0)
        var = jnp.sum(d * d, axis=1, keepdims=True) * inv_pn
        rstd = jax.lax.rsqrt(var + eps)
        o_ref[0] = jnp.maximum((y_all - mu) * rstd, 0.0).astype(o_ref.dtype)


# ---------------------------- two-pass fallback -------------------------------
def _conv_stats_kernel(p_ref, w_ref, y_ref, mean_ref, rstd_ref,
                       shift_ref, s1_ref, s2_ref, *, pn, tile_p, eps):
    """Pass 1: matmul + shifted running InstanceNorm statistics.

    Y is stored in the narrow compute dtype (bf16) to halve the round-trip HBM
    traffic; statistics are accumulated from the f32 MXU result *before* the
    downcast, using the first tile's per-channel mean as a shift so the
    one-pass variance formula does not cancel catastrophically.
    """
    p_idx = pl.program_id(2)
    y = jnp.dot(w_ref[...], p_ref[0], preferred_element_type=jnp.float32)
    y_ref[0] = y.astype(y_ref.dtype)

    @pl.when(p_idx == 0)
    def _init():
        shift_ref[...] = jnp.mean(y, axis=1, keepdims=True)
        s1_ref[...] = jnp.zeros_like(s1_ref)
        s2_ref[...] = jnp.zeros_like(s2_ref)

    col = p_idx * tile_p + jax.lax.broadcasted_iota(jnp.int32, y.shape, 1)
    d = jnp.where(col < pn, y - shift_ref[...], 0.0)   # padded cols masked out
    s1_ref[...] += jnp.sum(d, axis=1, keepdims=True)
    s2_ref[...] += jnp.sum(d * d, axis=1, keepdims=True)

    @pl.when(p_idx == pl.num_programs(2) - 1)
    def _finalize():
        inv_pn = 1.0 / pn
        m1 = s1_ref[...] * inv_pn
        var = jnp.maximum(s2_ref[...] * inv_pn - m1 * m1, 0.0)
        mean_ref[0] = shift_ref[...] + m1
        rstd_ref[0] = jax.lax.rsqrt(var + eps)


def _norm_relu_kernel(y_ref, mean_ref, rstd_ref, o_ref):
    """Pass 2: InstanceNorm apply + ReLU over lane-dense tiles."""
    z = (y_ref[0].astype(jnp.float32) - mean_ref[0]) * rstd_ref[0]
    o_ref[0] = jnp.maximum(z, 0.0).astype(o_ref.dtype)


# --------------------------------- wrapper ------------------------------------
def _im2col_3d(x, kernel, stride, padding):
    """x: (N, C, D, H, W) -> patches (N, K, P); K = C*kD*kH*kW (C-major, then
    kd, kh, kw — matches PyTorch OIDHW weight flattening), P = Do*Ho*Wo."""
    N, C, D, H, W = x.shape
    kD, kH, kW = kernel
    sD, sH, sW = stride
    pD, pH, pW = padding
    Do = (D + 2 * pD - kD) // sD + 1
    Ho = (H + 2 * pH - kH) // sH + 1
    Wo = (W + 2 * pW - kW) // sW + 1

    xp = jnp.pad(x, ((0, 0), (0, 0), (pD, pD), (pH, pH), (pW, pW)))
    cols = []
    for kd in range(kD):
        for kh in range(kH):
            for kw in range(kW):
                sl = xp[:, :,
                        kd:kd + sD * (Do - 1) + 1:sD,
                        kh:kh + sH * (Ho - 1) + 1:sH,
                        kw:kw + sW * (Wo - 1) + 1:sW]        # (N, C, Do, Ho, Wo)
                cols.append(sl)
    cols = jnp.stack(cols, axis=2)                            # (N, C, kkk, Do, Ho, Wo)
    K = C * kD * kH * kW
    P = Do * Ho * Wo
    return cols.reshape(N, K, P), (Do, Ho, Wo)


def convolution_forward(x, weight, bias, stride, padding, *,
                        tile_p=None, out_dtype=jnp.float32,
                        compute_dtype=jnp.bfloat16, force_two_pass=False):
    """Convolution.forward: Conv3d -> InstanceNorm3d(affine=False) -> ReLU.

    x: (N, C_in, D, H, W)   weight: (C_out, C_in, kD, kH, kW)   bias: (C_out,)
    returns (N, C_out, Do, Ho, Wo) in out_dtype.
    """
    # InstanceNorm(affine=False) subtracts the per-channel mean right after the
    # conv, so the conv bias is mathematically cancelled -> drop it.
    del bias

    N = x.shape[0]
    Cout = weight.shape[0]
    kernel = weight.shape[2:]

    # Cast to the compute dtype *before* im2col so the kD*kH*kW-inflated patch
    # array is materialized exactly once, in the narrow dtype.
    patches, (Do, Ho, Wo) = _im2col_3d(x.astype(compute_dtype), kernel,
                                       stride, padding)
    K = patches.shape[1]
    Pn = Do * Ho * Wo
    cd_bytes = jnp.dtype(compute_dtype).itemsize
    out_bytes = jnp.dtype(out_dtype).itemsize

    vmem_cap = _vmem_limit_bytes()

    # Cout tiling: only split when large & divisible — gives v7x's two
    # TensorCores a parallel axis even at batch 1; degenerate (1 tile) here.
    tile_c = 128 if (Cout >= 256 and Cout % 128 == 0) else Cout
    n_c = Cout // tile_c

    # Lane-dense P tile derived from the VMEM budget (multiple of 128).
    pn_ceil = int(pl.cdiv(Pn, 128)) * 128
    if tile_p is None:
        per_col = 2 * K * cd_bytes + 2 * tile_c * (cd_bytes + out_bytes)
        tile_p = (int(0.35 * vmem_cap) // per_col) // 128 * 128
        tile_p = min(tile_p, 8192)
    tile_p = int(max(128, min((int(tile_p) // 128) * 128, pn_ceil)))

    Pn_pad = int(pl.cdiv(Pn, tile_p)) * tile_p
    if Pn_pad != Pn:
        patches = jnp.pad(patches, ((0, 0), (0, 0), (0, Pn_pad - Pn)))
    n_p = Pn_pad // tile_p

    w_flat = weight.reshape(Cout, K).astype(compute_dtype)
    flops = 2 * N * Pn_pad * K * Cout

    # Fused single-pass path if the resident output block (+ pipeline buffers)
    # fits comfortably in VMEM.
    fused_vmem = (2 * tile_c * Pn_pad * out_bytes        # resident output block
                  + 2 * K * tile_p * cd_bytes            # patch double-buffer
                  + 2 * tile_c * K * cd_bytes)           # weight double-buffer
    use_fused = (not force_two_pass) and fused_vmem <= int(0.85 * vmem_cap)

    if use_fused:
        bytes_accessed = (N * K * Pn_pad * cd_bytes + Cout * K * cd_bytes
                          + N * Cout * Pn_pad * out_bytes)
        kern = functools.partial(_conv_norm_relu_fused_kernel,
                                 pn=Pn, tile_p=tile_p, eps=EPS)
        out = pl.pallas_call(
            kern,
            out_shape=jax.ShapeDtypeStruct((N, Cout, Pn_pad), out_dtype),
            grid_spec=pltpu.PrefetchScalarGridSpec(
                num_scalar_prefetch=0,
                grid=(N, n_c, n_p),
                in_specs=[
                    pl.BlockSpec((1, K, tile_p), lambda n, c, p: (n, 0, p)),
                    pl.BlockSpec((tile_c, K), lambda n, c, p: (c, 0)),
                ],
                out_specs=pl.BlockSpec((1, tile_c, Pn_pad),
                                       lambda n, c, p: (n, c, 0)),
            ),
            compiler_params=pltpu.CompilerParams(
                dimension_semantics=("parallel", "parallel", "arbitrary"),
                vmem_limit_bytes=vmem_cap),
            cost_estimate=pl.CostEstimate(
                flops=flops, transcendentals=0, bytes_accessed=bytes_accessed),
        )(patches, w_flat)
        return out[:, :, :Pn].reshape(N, Cout, Do, Ho, Wo)

    # ----- two-pass fallback: activation too large to keep VMEM-resident -----
    mid_dtype = compute_dtype
    mid_bytes = jnp.dtype(mid_dtype).itemsize
    bytes1 = (N * K * Pn_pad * cd_bytes + Cout * K * cd_bytes
              + N * Cout * Pn_pad * mid_bytes + 2 * N * Cout * 4)

    kern1 = functools.partial(_conv_stats_kernel, pn=Pn, tile_p=tile_p, eps=EPS)
    y_mid, mean, rstd = pl.pallas_call(
        kern1,
        out_shape=(
            jax.ShapeDtypeStruct((N, Cout, Pn_pad), mid_dtype),
            jax.ShapeDtypeStruct((N, Cout, 1), jnp.float32),
            jax.ShapeDtypeStruct((N, Cout, 1), jnp.float32),
        ),
        grid_spec=pltpu.PrefetchScalarGridSpec(
            num_scalar_prefetch=0,
            grid=(N, n_c, n_p),
            in_specs=[
                pl.BlockSpec((1, K, tile_p), lambda n, c, p: (n, 0, p)),
                pl.BlockSpec((tile_c, K), lambda n, c, p: (c, 0)),
            ],
            out_specs=(
                pl.BlockSpec((1, tile_c, tile_p), lambda n, c, p: (n, c, p)),
                pl.BlockSpec((1, tile_c, 1), lambda n, c, p: (n, c, 0)),
                pl.BlockSpec((1, tile_c, 1), lambda n, c, p: (n, c, 0)),
            ),
            scratch_shapes=[
                pltpu.VMEM((tile_c, 1), jnp.float32),   # per-channel shift
                pltpu.VMEM((tile_c, 1), jnp.float32),   # sum(y - shift)
                pltpu.VMEM((tile_c, 1), jnp.float32),   # sum((y - shift)^2)
            ],
        ),
        compiler_params=pltpu.CompilerParams(
            dimension_semantics=("parallel", "parallel", "arbitrary"),
            vmem_limit_bytes=vmem_cap),
        cost_estimate=pl.CostEstimate(
            flops=flops, transcendentals=0, bytes_accessed=bytes1),
    )(patches, w_flat)

    out = pl.pallas_call(
        _norm_relu_kernel,
        out_shape=jax.ShapeDtypeStruct((N, Cout, Pn_pad), out_dtype),
        grid_spec=pltpu.PrefetchScalarGridSpec(
            num_scalar_prefetch=0,
            grid=(N, n_c, n_p),
            in_specs=[
                pl.BlockSpec((1, tile_c, tile_p), lambda n, c, p: (n, c, p)),
                pl.BlockSpec((1, tile_c, 1), lambda n, c, p: (n, c, 0)),
                pl.BlockSpec((1, tile_c, 1), lambda n, c, p: (n, c, 0)),
            ],
            out_specs=pl.BlockSpec((1, tile_c, tile_p), lambda n, c, p: (n, c, p)),
        ),
        compiler_params=pltpu.CompilerParams(
            dimension_semantics=("parallel", "parallel", "parallel"),
            vmem_limit_bytes=vmem_cap),
    )(y_mid, mean, rstd)

    return out[:, :, :Pn].reshape(N, Cout, Do, Ho, Wo)


# -------------------------------- reference -----------------------------------
def _reference(x, weight, bias, stride, padding):
    y = jax.lax.conv_general_dilated(
        x.astype(jnp.float32), weight.astype(jnp.float32),
        window_strides=stride,
        padding=[(p, p) for p in padding],
        dimension_numbers=("NCDHW", "OIDHW", "NCDHW"))
    y = y + bias[None, :, None, None, None]
    mean = y.mean(axis=(2, 3, 4), keepdims=True)
    var = ((y - mean) ** 2).mean(axis=(2, 3, 4), keepdims=True)
    y = (y - mean) / jnp.sqrt(var + EPS)
    return jnp.maximum(y, 0.0)


if __name__ == "__main__":
    # Encoder's first TwoConv block uses kernel=3, stride=1, padding=1.
    N, Cin, Cout = 2, 4, 16
    D = H = W = 8
    kernel = (3, 3, 3)
    stride = (1, 1, 1)
    padding = (1, 1, 1)

    key = jax.random.PRNGKey(0)
    kx, kw, kb = jax.random.split(key, 3)
    x = jax.random.normal(kx, (N, Cin, D, H, W), dtype=jnp.float32)
    weight = 0.05 * jax.random.normal(kw, (Cout, Cin) + kernel, dtype=jnp.float32)
    bias = 0.01 * jax.random.normal(kb, (Cout,), dtype=jnp.float32)

    ref = jax.block_until_ready(_reference(x, weight, bias, stride, padding))

    # 1) Fused single-pass path, auto tile_p (production default, bf16 compute).
    fused_auto = jax.jit(functools.partial(
        convolution_forward, stride=stride, padding=padding))
    out = jax.block_until_ready(fused_auto(x, weight, bias))
    np.testing.assert_allclose(np.asarray(out), np.asarray(ref),
                               rtol=3e-2, atol=3e-2)

    # 2) Fused path, tile_p=128 (exercises multi-tile residency) with f32
    #    compute: validates the math independently of the bf16 trade-off.
    fused_f32 = jax.jit(functools.partial(
        convolution_forward, stride=stride, padding=padding,
        tile_p=128, compute_dtype=jnp.float32))
    out = jax.block_until_ready(fused_f32(x, weight, bias))
    np.testing.assert_allclose(np.asarray(out), np.asarray(ref),
                               rtol=5e-3, atol=5e-3)

    # 3) Two-pass fallback (forced): bf16 Y intermediate + shifted statistics.
    two_pass = jax.jit(functools.partial(
        convolution_forward, stride=stride, padding=padding,
        tile_p=128, force_two_pass=True))
    out = jax.block_until_ready(two_pass(x, weight, bias))
    np.testing.assert_allclose(np.asarray(out), np.asarray(ref),
                               rtol=3e-2, atol=3e-2)

    print("KERNEL_OK")
</pallas_src>

<mosaic_0001>
module attributes {stable_mosaic.version = 11 : i64} {
  func.func @_conv_norm_relu_fused_kernel(%arg0: i32, %arg1: i32, %arg2: i32, %arg3: memref<1x108x512xbf16, #tpu.memory_space<vmem>>, %arg4: memref<16x108xbf16, #tpu.memory_space<vmem>>, %arg5: memref<1x16x512xf32, #tpu.memory_space<vmem>>) attributes {dimension_semantics = [#tpu.dimension_semantics<parallel>, #tpu.dimension_semantics<parallel>, #tpu.dimension_semantics<arbitrary>], iteration_bounds = array<i64: 2, 1, 1>, scalar_prefetch = 0 : i64, scratch_operands = 0 : i64, tpu.core_type = #tpu.core_type<tc>, window_params = [{transform_indices = @transform_0, window_bounds = array<i64: 1, 108, 512>}, {transform_indices = @transform_1, window_bounds = array<i64: 16, 108>}, {transform_indices = @transform_2, window_bounds = array<i64: 1, 16, 512>}]} {
    %c0 = arith.constant 0 : index
    %c0_0 = arith.constant 0 : index
    %0 = vector.load %arg4[%c0, %c0_0] : memref<16x108xbf16, #tpu.memory_space<vmem>>, vector<16x108xbf16>
    %c0_1 = arith.constant 0 : index
    %c0_2 = arith.constant 0 : index
    %c0_3 = arith.constant 0 : index
    %1 = vector.load %arg3[%c0_1, %c0_2, %c0_3] : memref<1x108x512xbf16, #tpu.memory_space<vmem>>, vector<1x108x512xbf16>
    %2 = vector.shape_cast %1 : vector<1x108x512xbf16> to vector<108x512xbf16>
    %cst = arith.constant dense<0.000000e+00> : vector<16x512xf32>
    %3 = tpu.matmul %0, %2, %cst {dimension_numbers = #tpu.dot_dimension_numbers<[1], [0], [0], [1], [0, 0, 1, 1], [], []>} : vector<16x108xbf16>, vector<108x512xbf16>, vector<16x512xf32> -> vector<16x512xf32>
    %c512_i32 = arith.constant 512 : i32
    %4 = arith.muli %arg2, %c512_i32 : i32
    %5 = tpu.assume_multiple %4, 512 : i32
    %c0_4 = arith.constant 0 : index
    %c0_5 = arith.constant 0 : index
    %6 = arith.index_cast %5 : i32 to index
    %7 = vector.load %arg5[%c0_4, %c0_5, %6] : memref<1x16x512xf32, #tpu.memory_space<vmem>>, vector<1x16x512xf32>
    %8 = vector.shape_cast %7 : vector<1x16x512xf32> to vector<16x512xf32>
    %9 = vector.shape_cast %3 : vector<16x512xf32> to vector<1x16x512xf32>
    tpu.vector_store %arg5[%c0_4, %c0_5, %6], %9 {strides = array<i32>} : memref<1x16x512xf32, #tpu.memory_space<vmem>>, vector<1x16x512xf32>,
    %c0_i32 = arith.constant 0 : i32
    %10 = arith.cmpi eq, %arg2, %c0_i32 : i32
    %11 = arith.extui %10 : i1 to i32
    %c0_i32_6 = arith.constant 0 : i32
    %12 = arith.cmpi ne, %11, %c0_i32_6 : i32
    scf.if %12 {
      %c0_7 = arith.constant 0 : index
      %c0_8 = arith.constant 0 : index
      %c0_9 = arith.constant 0 : index
      %13 = vector.load %arg5[%c0_7, %c0_8, %c0_9] : memref<1x16x512xf32, #tpu.memory_space<vmem>>, vector<1x16x512xf32>
      %14 = vector.shape_cast %13 : vector<1x16x512xf32> to vector<16x512xf32>
      %15 = tpu.iota {dimensions = array<i32: 1>} : vector<1x512xi32>
      %c512_i32_10 = arith.constant 512 : i32
      %16 = vector.broadcast %c512_i32_10 : i32 to vector<1x512xi32>
      %17 = arith.cmpi slt, %15, %16 : vector<1x512xi32>
      %cst_11 = arith.constant 0.000000e+00 : f32
      %18 = vector.shape_cast %17 : vector<1x512xi1> to vector<1x512xi1>
      %19 = vector.broadcast %18 : vector<1x512xi1> to vector<16x512xi1>
      %20 = vector.broadcast %cst_11 : f32 to vector<16x512xf32>
      %21 = arith.select %19, %14, %20 : vector<16x512xi1>, vector<16x512xf32>
      %cst_12 = arith.constant dense<0.000000e+00> : vector<16xf32>
      %22 = vector.multi_reduction <add>, %21, %cst_12 [1] : vector<16x512xf32> to vector<16xf32>
      %23 = vector.shape_cast %22 : vector<16xf32> to vector<16x1xf32>
      %cst_13 = arith.constant 0.001953125 : f32
      %24 = vector.broadcast %cst_13 : f32 to vector<16x1xf32>
      %25 = arith.mulf %23, %24 : vector<16x1xf32>
      %26 = vector.broadcast %25 : vector<16x1xf32> to vector<16x512xf32>
      %27 = arith.subf %14, %26 : vector<16x512xf32>
      %cst_14 = arith.constant 0.000000e+00 : f32
      %28 = vector.shape_cast %17 : vector<1x512xi1> to vector<1x512xi1>
      %29 = vector.broadcast %28 : vector<1x512xi1> to vector<16x512xi1>
      %30 = vector.broadcast %cst_14 : f32 to vector<16x512xf32>
      %31 = arith.select %29, %27, %30 : vector<16x512xi1>, vector<16x512xf32>
      %32 = arith.mulf %31, %31 : vector<16x512xf32>
      %cst_15 = arith.constant dense<0.000000e+00> : vector<16xf32>
      %33 = vector.multi_reduction <add>, %32, %cst_15 [1] : vector<16x512xf32> to vector<16xf32>
      %34 = vector.shape_cast %33 : vector<16xf32> to vector<16x1xf32>
      %cst_16 = arith.constant 0.001953125 : f32
      %35 = vector.broadcast %cst_16 : f32 to vector<16x1xf32>
      %36 = arith.mulf %34, %35 : vector<16x1xf32>
      %cst_17 = arith.constant 9.99999974E-6 : f32
      %37 = vector.broadcast %cst_17 : f32 to vector<16x1xf32>
      %38 = arith.addf %36, %37 : vector<16x1xf32>
      %39 = math.rsqrt %38 : vector<16x1xf32>
      %40 = vector.broadcast %25 : vector<16x1xf32> to vector<16x512xf32>
      %41 = arith.subf %14, %40 : vector<16x512xf32>
      %42 = vector.broadcast %39 : vector<16x1xf32> to vector<16x512xf32>
      %43 = arith.mulf %41, %42 : vector<16x512xf32>
      %cst_18 = arith.constant 0.000000e+00 : f32
      %44 = vector.broadcast %cst_18 : f32 to vector<16x512xf32>
      %45 = arith.maximumf %43, %44 : vector<16x512xf32>
      %c0_19 = arith.constant 0 : index
      %c0_20 = arith.constant 0 : index
      %c0_21 = arith.constant 0 : index
      %46 = vector.load %arg5[%c0_19, %c0_20, %c0_21] : memref<1x16x512xf32, #tpu.memory_space<vmem>>, vector<1x16x512xf32>
      %47 = vector.shape_cast %46 : vector<1x16x512xf32> to vector<16x512xf32>
      %48 = vector.shape_cast %45 : vector<16x512xf32> to vector<1x16x512xf32>
      tpu.vector_store %arg5[%c0_19, %c0_20, %c0_21], %48 {strides = array<i32>} : memref<1x16x512xf32, #tpu.memory_space<vmem>>, vector<1x16x512xf32>,
    } else {
    }
    return
  }
  func.func @transform_0(%arg0: i32, %arg1: i32, %arg2: i32) -> (i32, i32, i32) {
    %c0_i32 = arith.constant 0 : i32
    %c0_i32_0 = arith.constant 0 : i32
    return %arg0, %c0_i32, %arg2 : i32, i32, i32
  }
  func.func @transform_1(%arg0: i32, %arg1: i32, %arg2: i32) -> (i32, i32) {
    %c0_i32 = arith.constant 0 : i32
    %c0_i32_0 = arith.constant 0 : i32
    return %arg1, %c0_i32 : i32, i32
  }
  func.func @transform_2(%arg0: i32, %arg1: i32, %arg2: i32) -> (i32, i32, i32) {
    %c0_i32 = arith.constant 0 : i32
    %c0_i32_0 = arith.constant 0 : i32
    return %arg0, %arg1, %c0_i32 : i32, i32, i32
  }
}

</mosaic_0001>

<bundles_post_ra>
// kernel: convolution_forward.1
= control target key start
LH: loop header
LB: loop body
LE: loop exit
PB: predicated region body
PF: predicated region fallthrough
CT: control target
= control target key end

     0   :  { %s886_s9 = smov 0   ;;  %s888_s10 = smov 0   ;;  %s956_s0 = inlined_call_operand.vmem [shape: bf16[2,108,512], index: 0, kind: input, shape index: {}]   ;;  %s957_s1 = inlined_call_operand.vmem [shape: bf16[16,108], index: 1, kind: input, shape index: {}]   ;;  %s958_s2 = inlined_call_operand.vmem [shape: f32[2,16,512], index: 2, kind: output, shape index: {}]  }
   0x1   :  { %s890_s11 = smov 0  }
   0x2 LB: > { %s31_s12 = sadd.s32 1, %s864_s10  ;;  %p733_p0 = scmp.ge.s32.totalorder %s868_s11, 1  ;;  %s868_s11 = sphi %s890_s11, %s12_s11   ;;  %s864_s10 = sphi %s888_s10, %s960_s10   ;;  %s860_s9 = sphi %s886_s9, %s959_s9  }
   0x3   : > { %p33_p1 = scmp.ge.s32.totalorder %s31_s12, 2  ;;  %p151_p2 = scmp.lt.s32.totalorder %s868_s11, 3 }
   0x5   : > { %s962_s12 = smov (%p33_p1, %s31_s12), 0  ;;  %p152_p3 = pnand %p733_p0, %p151_p2 }
   0x6   : > { %p188_p4 = scmp.lt.s32.totalorder (!%p152_p3), %s860_s9, 1 }
   0x7   : > { %155 = sbr.rel (%p152_p3) target bundleno = 563 (0x233), region = 28 }
   0xc   : > { %v870_v0 = vmov 0   ;;  %s964_s9 = smov (!%p188_p4, %s860_s9), 1  ;;  %vm390_vm0 = vcmask 1045504   ;;  %v841_v31 = vld [vmem:[%s957_s1] sm:$0xff]   ;;  %vm386_vm1 = vcmask 883712  }
   0xd   : > { %435 = vmatprep.mubr.bf16.mxu0 %v870_v0  ;;  %478 = vmatprep.mubr.bf16.mxu1 %v870_v0  ;;  %s773_s13 = smul.u32 224, %s964_s9  ;;  %s772_s19 = sshll.u32 %s964_s9, 6 }
   0xe   : > { %s212_s22 = scalar_lea.vmem %s958_s2, %s772_s19 }
   0xf   : > { %s910_s16 = scalar_lea.vmem %s956_s0, %s773_s13 }
  0x10   : > { %v799_v1 = vld [vmem:[%s910_s16 + $0xc4] ss:$16 sps:$4 sm:$0x3f]   ;;  %v801_v2 = vld [vmem:[%s910_s16 + $0xcc] ss:$16 sps:$4 sm:$0x3f]  }
  0x11   : > { %766 = vmatprep.subr.msk.bf16.mxu0 %vm390_vm0, %v799_v1  ;;  %v803_v3 = vld [vmem:[%s910_s16 + $0xc0] ss:$16 sps:$4 sm:$0x3f]   ;;  %v804_v4 = vld [vmem:[%s910_s16 + $0xc8] ss:$16 sps:$4 sm:$0x3f]   ;;  %768 = vmatprep.subr.msk.bf16.mxu1 %vm390_vm0, %v801_v2 }
  0x12   : > { %v805_v5 = vld [vmem:[%s910_s16 + $0xa4] ss:$16 sps:$4 sm:$0xff]   ;;  %v392_v6 = vsel %vm390_vm0, %v803_v3, 0  ;;  %v398_v7 = vsel %vm390_vm0, %v804_v4, 0  ;;  %v807_v8 = vld [vmem:[%s910_s16 + $0xac] ss:$16 sps:$4 sm:$0xff]  }
  0x13   : > { %406 = vmatpush1.bf16.msra.mxu0 %v392_v6  ;;  %449 = vmatpush1.bf16.msra.mxu1 %v398_v7  ;;  %v809_v9 = vld [vmem:[%s910_s16 + $0xa0] ss:$16 sps:$4 sm:$0xff]   ;;  %v810_v10 = vld [vmem:[%s910_s16 + $0xa8] ss:$16 sps:$4 sm:$0xff]   ;;  %v811_v11 = vld [vmem:[%s910_s16 + $0x84] ss:$16 sps:$4 sm:$0xff]  }
  0x14   : > { %407 = vmatprep.subr.bf16.mxu0 %v805_v5  ;;  %450 = vmatprep.subr.bf16.mxu1 %v807_v8  ;;  %v813_v12 = vld [vmem:[%s910_s16 + $0x8c] ss:$16 sps:$4 sm:$0xff]   ;;  %v815_v13 = vld [vmem:[%s910_s16 + $0x80] ss:$16 sps:$4 sm:$0xff]   ;;  %v816_v14 = vld [vmem:[%s910_s16 + $0x88] ss:$16 sps:$4 sm:$0xff]  }
  0x15   : > { %v817_v15 = vld [vmem:[%s910_s16 + $0x64] ss:$16 sps:$4 sm:$0xff]   ;;  %v819_v16 = vld [vmem:[%s910_s16 + $0x6c] ss:$16 sps:$4 sm:$0xff]   ;;  %v821_v17 = vld [vmem:[%s910_s16 + $0x60] ss:$16 sps:$4 sm:$0xff]  }
  0x16   : > { %v822_v18 = vld [vmem:[%s910_s16 + $0x68] ss:$16 sps:$4 sm:$0xff]   ;;  %v823_v19 = vld [vmem:[%s910_s16 + $0x44] ss:$16 sps:$4 sm:$0xff]   ;;  %v825_v20 = vld [vmem:[%s910_s16 + $0x4c] ss:$16 sps:$4 sm:$0xff]  }
  0x17   : > { %408 = vmatpush1.bf16.msra.mxu0 %v809_v9  ;;  %451 = vmatpush1.bf16.msra.mxu1 %v810_v10  ;;  %v827_v21 = vld [vmem:[%s910_s16 + $0x40] ss:$16 sps:$4 sm:$0xff]   ;;  %v828_v22 = vld [vmem:[%s910_s16 + $0x48] ss:$16 sps:$4 sm:$0xff]   ;;  %v829_v23 = vld [vmem:[%s910_s16 + $0x24] ss:$16 sps:$4 sm:$0xff]  }
  0x18   : > { %409 = vmatprep.subr.bf16.mxu0 %v811_v11  ;;  %452 = vmatprep.subr.bf16.mxu1 %v813_v12  ;;  %v831_v24 = vld [vmem:[%s910_s16 + $0x2c] ss:$16 sps:$4 sm:$0xff]   ;;  %v833_v25 = vld [vmem:[%s910_s16 + $0x20] ss:$16 sps:$4 sm:$0xff]   ;;  %v834_v26 = vld [vmem:[%s910_s16 + $0x28] ss:$16 sps:$4 sm:$0xff]  }
  0x19   : > { %v835_v27 = vld [vmem:[%s910_s16 + $0x4] ss:$16 sps:$4 sm:$0xff]   ;;  %v837_v28 = vld [vmem:[%s910_s16 + $0xc] ss:$16 sps:$4 sm:$0xff]   ;;  %v839_v29 = vld [vmem:[%s910_s16] ss:$16 sps:$4 sm:$0xff]  }
  0x1a   : > { %v840_v30 = vld [vmem:[%s910_s16 + $0x8] ss:$16 sps:$4 sm:$0xff]  }
  0x1b   : > { %410 = vmatpush1.bf16.msra.mxu0 %v815_v13  ;;  %453 = vmatpush1.bf16.msra.mxu1 %v816_v14 }
  0x1c   : > { %411 = vmatprep.subr.bf16.mxu0 %v817_v15  ;;  %454 = vmatprep.subr.bf16.mxu1 %v819_v16 }
  0x1f   : > { %412 = vmatpush1.bf16.msra.mxu0 %v821_v17  ;;  %455 = vmatpush1.bf16.msra.mxu1 %v822_v18 }
  0x20   : > { %413 = vmatprep.subr.bf16.mxu0 %v823_v19  ;;  %456 = vmatprep.subr.bf16.mxu1 %v825_v20 }
  0x23   : > { %414 = vmatpush1.bf16.msra.mxu0 %v827_v21  ;;  %457 = vmatpush1.bf16.msra.mxu1 %v828_v22 }
  0x24   : > { %415 = vmatprep.subr.bf16.mxu0 %v829_v23  ;;  %458 = vmatprep.subr.bf16.mxu1 %v831_v24 }
  0x27   : > { %416 = vmatpush1.bf16.msra.mxu0 %v833_v25  ;;  %459 = vmatpush1.bf16.msra.mxu1 %v834_v26 }
  0x28   : > { %417 = vmatprep.subr.bf16.mxu0 %v835_v27  ;;  %460 = vmatprep.subr.bf16.mxu1 %v837_v28 }
  0x2b   : > { %418 = vmatpush1.bf16.msra.mxu0 %v839_v29  ;;  %461 = vmatpush1.bf16.msra.mxu1 %v840_v30 }
  0x2e   : > { %767 = vmatmul.mubr.msk.bf16.vlgmr.msra.gmra.mxu0 %vm386_vm1, %v841_v31  ;;  %769 = vmatmul.mubr.msk.bf16.vlgmr.msra.gmra.mxu1 %vm386_vm1, %v841_v31 }
  0xee   : > { %v437_v32 = vpop.f32.mrf.mxu0  ;;  %v480_v33 = vpop.f32.mrf.mxu1 }
  0xf0   : > { %v439_v34 = vpop.f32.mrf.mxu0  ;;  %v482_v35 = vpop.f32.mrf.mxu1 }
  0xf1   : > { %v539_v36 = vadd.f32 %v439_v34, %v437_v32 }
  0xf2   : > { %v441_v37 = vpop.f32.mrf.mxu0  ;;  %v484_v39 = vpop.f32.mrf.mxu1 }
  0xf3   : > { %v540_v38 = vadd.f32 %v539_v36, %v480_v33 }
  0xf4   : > { %v443_v40 = vpop.f32.mrf.mxu0  ;;  %v486_v44 = vpop.f32.mrf.mxu1 }
  0xf5   : > { %v541_v41 = vadd.f32 %v540_v38, %v482_v35  ;;  %v544_v42 = vadd.f32 %v443_v40, %v441_v37 }
  0xf7   : > { %542 = vadd.xlane.f32.xlu0 %v541_v41  ;;  %v545_v43 = vadd.f32 %v544_v42, %v484_v39 }
  0xf9   : > { %v546_v45 = vadd.f32 %v545_v43, %v486_v44 }
  0xfb   : > { %547 = vadd.xlane.f32.xlu0 %v546_v45 }
 0x180   : > { %v543_v46 = vpop.xlane.xlu0 %542 }
 0x181   : > { %v549_v47 = vmul.f32 0.001953125, %v543_v46 }
 0x183   : > { %v551_v48 = vsub.f32 %v437_v32, %v549_v47  ;;  %v552_v49 = vsub.f32 %v439_v34, %v549_v47  ;;  %v553_v50 = vsub.f32 %v480_v33, %v549_v47  ;;  %v554_v52 = vsub.f32 %v482_v35, %v549_v47 }
 0x184   : > { %v548_v51 = vpop.xlane.xlu0 %547 }
 0x185   : > { %v550_v53 = vmul.f32 0.001953125, %v548_v51  ;;  %v567_v54 = vmul.f32 %v551_v48, %v551_v48  ;;  %v568_v55 = vmul.f32 %v552_v49, %v552_v49  ;;  %v569_v56 = vmul.f32 %v553_v50, %v553_v50 }
 0x186   : > { %v570_v61 = vmul.f32 %v554_v52, %v554_v52 }
 0x187   : > { %v555_v57 = vsub.f32 %v441_v37, %v550_v53  ;;  %v556_v58 = vsub.f32 %v443_v40, %v550_v53  ;;  %v575_v59 = vadd.f32 %v568_v55, %v567_v54  ;;  %v557_v60 = vsub.f32 %v484_v39, %v550_v53 }
 0x188   : > { %v558_v63 = vsub.f32 %v486_v44, %v550_v53 }
 0x189   : > { %v576_v62 = vadd.f32 %v575_v59, %v569_v56  ;;  %v571_v0 = vmul.f32 %v555_v57, %v555_v57  ;;  %v572_v1 = vmul.f32 %v556_v58, %v556_v58  ;;  %v573_v3 = vmul.f32 %v557_v60, %v557_v60 }
 0x18a   : > { %v574_v5 = vmul.f32 %v558_v63, %v558_v63 }
 0x18b   : > { %v577_v2 = vadd.f32 %v576_v62, %v570_v61  ;;  %v580_v4 = vadd.f32 %v572_v1, %v571_v0 }
 0x18d   : > { %578 = vadd.xlane.f32.xlu1 %v577_v2  ;;  %v581_v6 = vadd.f32 %v580_v4, %v573_v3 }
 0x18f   : > { %v582_v7 = vadd.f32 %v581_v6, %v574_v5 }
 0x191   : > { %583 = vadd.xlane.f32.xlu1 %v582_v7 }
 0x216   : > { %v579_v8 = vpop.xlane.xlu1 %578 }
 0x217   : > { %v585_v9 = vmul.f32 0.001953125, %v579_v8 }
 0x219   : > { %v587_v10 = vadd.f32 1e-05, %v585_v9 }
 0x21a   : > { %v584_v11 = vpop.xlane.xlu1 %583 }
 0x21b   : > { %842 = vrsqrt.f32 %v587_v10  ;;  %v586_v12 = vmul.f32 0.001953125, %v584_v11 }
 0x21d   : > { %v588_v13 = vadd.f32 1e-05, %v586_v12 }
 0x21f   : > { %844 = vrsqrt.f32 %v588_v13 }
 0x228   : > { %v843_v14 = vpop.eup %842 }
 0x229   : > { %v591_v15 = vmul.f32 %v843_v14, %v551_v48  ;;  %v592_v16 = vmul.f32 %v843_v14, %v552_v49  ;;  %v593_v17 = vmul.f32 %v843_v14, %v553_v50  ;;  %v594_v18 = vmul.f32 %v843_v14, %v554_v52 }
 0x22b   : > { %v599_v19 = vmax.f32 %v591_v15, 0.0  ;;  %v600_v20 = vmax.f32 %v592_v16, 0.0  ;;  %v601_v21 = vmax.f32 %v593_v17, 0.0  ;;  %v602_v22 = vmax.f32 %v594_v18, 0.0 }
 0x22c   : > { %v845_v23 = vpop.eup %844 }
 0x22d   : > { %607 = vst [vmem:[%s212_s22] sm:$0xff] %v599_v19  ;;  %608 = vst [vmem:[%s212_s22 + $0x8] sm:$0xff] %v600_v20  ;;  %v595_v24 = vmul.f32 %v845_v23, %v555_v57  ;;  %v596_v25 = vmul.f32 %v845_v23, %v556_v58  ;;  %v597_v26 = vmul.f32 %v845_v23, %v557_v60 }
 0x22e   : > { %609 = vst [vmem:[%s212_s22 + $0x10] sm:$0xff] %v601_v21  ;;  %610 = vst [vmem:[%s212_s22 + $0x18] sm:$0xff] %v602_v22  ;;  %v598_v27 = vmul.f32 %v845_v23, %v558_v63 }
 0x22f   : > { %v603_v28 = vmax.f32 %v595_v24, 0.0  ;;  %v604_v29 = vmax.f32 %v596_v25, 0.0  ;;  %v605_v30 = vmax.f32 %v597_v26, 0.0 }
 0x230   : > { %v606_v31 = vmax.f32 %v598_v27, 0.0 }
 0x231   : > { %611 = vst [vmem:[%s212_s22 + $0x20] sm:$0xff] %v603_v28  ;;  %612 = vst [vmem:[%s212_s22 + $0x28] sm:$0xff] %v604_v29 }
 0x232   : > { %613 = vst [vmem:[%s212_s22 + $0x30] sm:$0xff] %v605_v30  ;;  %614 = vst [vmem:[%s212_s22 + $0x38] sm:$0xff] %v606_v31 }
 0x233 PF: > { %s12_s11 = sadd.s32 1, %s868_s11   ;;  %s959_s9 = smov %s864_s10 }
 0x234   : > { %p9_p5 = scmp.ge.s32.totalorder %s12_s11, 4   ;;  %s960_s10 = smov %s962_s12 }
 0x236   :  { %11 = sbr.rel (!%p9_p5) target bundleno = 2 (0x2), region = 66 }

</bundles_post_ra>
